<compile_context>
chip_gen: v6e
topology: v6e:2x2x1
jax: 0.10.0
libtpu: 0.0.40
codegen_flags: <defaults>
</compile_context>

<pallas_src>
import functools
import math

import numpy as np
import jax
import jax.numpy as jnp
from jax.experimental import pallas as pl
from jax.experimental.pallas import tpu as pltpu

_SQRT_HALF = float(math.sqrt(0.5))
_BN_EPS = 1e-5


def _round_up(v, m):
    return -(-v // m) * m


def _ft_kernel(first_no_res, rc_ref, x_ref, wa_ref, wg_ref, vec_ref, o_ref,
               act_ref):
    """Fused FeatureTransformer kernel body.

    Grid: (chunk, layer).  act_ref is the VMEM-resident activation carried
    across the layer axis; o_ref is written once at the last layer.
    """
    c = pl.program_id(0)
    l = pl.program_id(1)
    n_layers = pl.num_programs(1)

    # Load the (padded) input into the activation carrier at layer 0.
    @pl.when(l == 0)
    def _():
        act_ref[...] = x_ref[...]

    h = act_ref[...]                                   # (R, Dpad) f32

    # Per-layer per-feature vectors: rows = b_a, b_g, gamma_a, gamma_g, beta_a, beta_g
    v = vec_ref[l]                                     # (8, Dpad) f32
    b_a, b_g = v[0:1, :], v[1:2, :]
    g_a, g_g = v[2:3, :], v[3:4, :]
    t_a, t_g = v[4:5, :], v[5:6, :]

    # Linear layer, split into two 128-lane-aligned halves (value / gate).
    hb = h.astype(jnp.bfloat16)
    za = jnp.dot(hb, wa_ref[l], preferred_element_type=jnp.float32) + b_a
    zg = jnp.dot(hb, wg_ref[l], preferred_element_type=jnp.float32) + b_g

    # Ghost-batch-norm (train-mode, biased variance) over the real rows only.
    nrows = rc_ref[c]
    row_ids = jax.lax.broadcasted_iota(jnp.int32, za.shape, 0)
    mask = (row_ids < nrows).astype(jnp.float32)
    nf = nrows.astype(jnp.float32)

    def _bn(z, gamma, beta):
        zm = z * mask
        m = jnp.sum(zm, axis=0, keepdims=True) / nf
        ez2 = jnp.sum(zm * z, axis=0, keepdims=True) / nf
        var = jnp.maximum(ez2 - m * m, 0.0)
        return (z - m) * jax.lax.rsqrt(var + _BN_EPS) * gamma + beta

    a = _bn(za, g_a, t_a)
    g = _bn(zg, g_g, t_g)
    glu = a * jax.nn.sigmoid(g)

    @pl.when(l == 0)
    def _():
        if first_no_res:                               # static Python bool
            act_ref[...] = glu
        else:
            act_ref[...] = (h + glu) * _SQRT_HALF

    @pl.when(l > 0)
    def _():
        act_ref[...] = (h + glu) * _SQRT_HALF

    @pl.when(l == n_layers - 1)
    def _():
        o_ref[...] = act_ref[...]


def feature_transformer(x, shared_params, independ_params, vbs=128):
    """Forward pass of TabNet's FeatureTransformer (one fused pallas_call).

    shared_params / independ_params: lists of (W, b, gamma, beta) tuples with
    W of shape (D_in, 2*D_out); b/gamma/beta of shape (1, 2*D_out).
    """
    params = list(shared_params) + list(independ_params)
    assert params, "need at least one GLU block"
    n_layers = len(params)
    first_no_res = bool(shared_params)

    B, inp_dim = x.shape
    out_dim = params[0][0].shape[1] // 2
    d_pad = max(_round_up(inp_dim, 128), _round_up(out_dim, 128))

    # Ghost-batch chunking, matching torch.chunk(x, max(1, B // vbs), 0).
    n_req = max(1, B // vbs)
    chunk_size = -(-B // n_req)                     # torch.chunk chunk size
    n_chunks = -(-B // chunk_size)                  # actual number of chunks
    chunk_rows = max(8, _round_up(chunk_size, 8))   # sublane-aligned block rows

    row_counts_np = np.full((n_chunks,), chunk_size, np.int32)
    row_counts_np[-1] = B - (n_chunks - 1) * chunk_size
    row_counts = jnp.asarray(row_counts_np)

    # Lane-dense, sublane-aligned input slab: one chunk_rows stripe per ghost batch.
    x_cols = jnp.pad(x.astype(jnp.float32), ((0, 0), (0, d_pad - inp_dim)))
    if n_chunks * chunk_rows == B:
        x_pad = x_cols
    else:
        x_pad = jnp.zeros((n_chunks * chunk_rows, d_pad), jnp.float32)
        for c in range(n_chunks):
            lo = c * chunk_size
            hi = min(B, lo + chunk_size)
            x_pad = x_pad.at[c * chunk_rows:c * chunk_rows + (hi - lo)].set(
                x_cols[lo:hi])

    # Stack per-layer params: bf16 weights split into aligned halves, plus an
    # (L, 8, d_pad) f32 table of bias/gamma/beta rows (padded features -> 0,
    # which keeps padded output columns identically zero through every layer).
    wa_l, wg_l, vec_l = [], [], []
    for (w, b, gamma, beta) in params:
        d_in, d2 = w.shape
        d_out = d2 // 2

        def pad_w(m, d_in=d_in, d_out=d_out):
            return jnp.pad(m, ((0, d_pad - d_in), (0, d_pad - d_out)))

        def pad_v(vrow, d_out=d_out):
            return jnp.pad(vrow.reshape(-1), (0, d_pad - d_out))

        wa_l.append(pad_w(w[:, :d_out]).astype(jnp.bfloat16))
        wg_l.append(pad_w(w[:, d_out:]).astype(jnp.bfloat16))
        zrow = jnp.zeros((d_pad,), jnp.float32)
        vec_l.append(jnp.stack([
            pad_v(b[..., :d_out]), pad_v(b[..., d_out:]),
            pad_v(gamma[..., :d_out]), pad_v(gamma[..., d_out:]),
            pad_v(beta[..., :d_out]), pad_v(beta[..., d_out:]),
            zrow, zrow]))
    wa = jnp.stack(wa_l)                               # (L, d_pad, d_pad) bf16
    wg = jnp.stack(wg_l)                               # (L, d_pad, d_pad) bf16
    vec = jnp.stack(vec_l).astype(jnp.float32)         # (L, 8, d_pad) f32

    grid_spec = pltpu.PrefetchScalarGridSpec(
        num_scalar_prefetch=1,
        grid=(n_chunks, n_layers),
        in_specs=[
            # activation input: one block per ghost-batch chunk
            pl.BlockSpec((chunk_rows, d_pad), lambda c, l, rc: (c, 0)),
            # stacked weights / vectors: constant index -> VMEM-resident
            pl.BlockSpec((n_layers, d_pad, d_pad), lambda c, l, rc: (0, 0, 0)),
            pl.BlockSpec((n_layers, d_pad, d_pad), lambda c, l, rc: (0, 0, 0)),
            pl.BlockSpec((n_layers, 8, d_pad), lambda c, l, rc: (0, 0, 0)),
        ],
        out_specs=pl.BlockSpec((chunk_rows, d_pad), lambda c, l, rc: (c, 0)),
        scratch_shapes=[pltpu.VMEM((chunk_rows, d_pad), jnp.float32)],
    )

    out_padded = pl.pallas_call(
        functools.partial(_ft_kernel, first_no_res),
        out_shape=jax.ShapeDtypeStruct((n_chunks * chunk_rows, d_pad),
                                       jnp.float32),
        grid_spec=grid_spec,
        compiler_params=pltpu.CompilerParams(
            dimension_semantics=("parallel", "arbitrary")),
    )(row_counts, x_pad, wa, wg, vec)

    # Strip row/column padding (equivalent to torch.cat of per-chunk results).
    if n_chunks * chunk_rows == B:
        return out_padded[:, :out_dim]
    pieces = [
        out_padded[c * chunk_rows:c * chunk_rows + int(row_counts_np[c]),
                   :out_dim]
        for c in range(n_chunks)
    ]
    return pieces[0] if n_chunks == 1 else jnp.concatenate(pieces, axis=0)


def _init_glu_params(key, d_in, d_out):
    k1, k2, k3, k4 = jax.random.split(key, 4)
    w = jax.random.normal(k1, (d_in, 2 * d_out), jnp.float32) * 0.1
    b = jax.random.normal(k2, (1, 2 * d_out), jnp.float32) * 0.05
    gamma = 1.0 + jax.random.normal(k3, (1, 2 * d_out), jnp.float32) * 0.05
    beta = jax.random.normal(k4, (1, 2 * d_out), jnp.float32) * 0.05
    return (w, b, gamma, beta)


def _reference(x, shared_params, independ_params, vbs):
    """Pure-JAX reference (same bf16 weight cast / BN formula as the kernel)."""

    def glu_block(h, p):
        w, b, gamma, beta = p
        wb = w.astype(jnp.bfloat16)
        n_b = h.shape[0]
        n_req = max(1, n_b // vbs)
        cs = -(-n_b // n_req)
        d = w.shape[1] // 2
        outs = []
        for lo in range(0, n_b, cs):
            hi = min(n_b, lo + cs)
            z = jnp.dot(h[lo:hi].astype(jnp.bfloat16), wb,
                        preferred_element_type=jnp.float32) + b
            m = jnp.mean(z, axis=0, keepdims=True)
            var = jnp.maximum(jnp.mean(z * z, axis=0, keepdims=True) - m * m,
                              0.0)
            zn = (z - m) * jax.lax.rsqrt(var + _BN_EPS) * gamma + beta
            outs.append(zn[:, :d] * jax.nn.sigmoid(zn[:, d:]))
        return outs[0] if len(outs) == 1 else jnp.concatenate(outs, 0)

    s = jnp.float32(_SQRT_HALF)
    h = x.astype(jnp.float32)
    shared_params = list(shared_params)
    if shared_params:
        h = glu_block(h, shared_params[0])
        for p in shared_params[1:]:
            h = (h + glu_block(h, p)) * s
    for p in independ_params:
        h = (h + glu_block(h, p)) * s
    return h


if __name__ == "__main__":
    # Small, deterministic configuration consistent with the PyTorch module:
    #   batch=8, inp_dim=16, out_dim=16, 2 shared GLUs, 2 independent GLUs,
    #   vbs=128 (batch < vbs => a single ghost batch).
    B, INP_DIM, OUT_DIM = 8, 16, 16
    N_SHARED, N_IND, VBS = 2, 2, 128

    root = jax.random.PRNGKey(0)
    keys = jax.random.split(root, 1 + N_SHARED + N_IND)

    x = jax.random.normal(keys[0], (B, INP_DIM), jnp.float32)

    shared_params = []
    for i in range(N_SHARED):
        d_in = INP_DIM if i == 0 else OUT_DIM
        shared_params.append(_init_glu_params(keys[1 + i], d_in, OUT_DIM))

    independ_params = []
    for i in range(N_IND):
        independ_params.append(
            _init_glu_params(keys[1 + N_SHARED + i], OUT_DIM, OUT_DIM))

    out = feature_transformer(x, shared_params, independ_params, vbs=VBS)
    out = jax.block_until_ready(out)

    assert out.shape == (B, OUT_DIM), out.shape
    assert bool(jnp.all(jnp.isfinite(out)))

    ref = _reference(x, shared_params, independ_params, VBS)
    assert bool(jnp.allclose(out, ref, rtol=2e-2, atol=2e-2)), (
        "max abs diff vs reference: %f" % float(jnp.max(jnp.abs(out - ref))))

    # TODO(synk): BatchNorm1d running-mean/var buffer updates (a training-time
    # side effect, not part of the forward output) are not materialized.
    print("KERNEL_OK")
</pallas_src>

<mosaic_0001>
module attributes {stable_mosaic.version = 11 : i64} {
  func.func @_ft_kernel(%arg0: i32, %arg1: i32, %arg2: memref<1xi32, #tpu.memory_space<smem>>, %arg3: memref<8x128xf32, #tpu.memory_space<vmem>>, %arg4: memref<4x128x128xbf16, #tpu.memory_space<vmem>>, %arg5: memref<4x128x128xbf16, #tpu.memory_space<vmem>>, %arg6: memref<4x8x128xf32, #tpu.memory_space<vmem>>, %arg7: memref<8x128xf32, #tpu.memory_space<vmem>>, %arg8: memref<8x128xf32, #tpu.memory_space<vmem>>) attributes {dimension_semantics = [#tpu.dimension_semantics<parallel>, #tpu.dimension_semantics<arbitrary>], iteration_bounds = array<i64: 1, 4>, scalar_prefetch = 1 : i64, scratch_operands = 1 : i64, tpu.core_type = #tpu.core_type<tc>, window_params = [{transform_indices = @transform_0, window_bounds = array<i64: 8, 128>}, {pipeline_mode = #tpu.pipeline_mode<synchronous>, transform_indices = @transform_1, window_bounds = array<i64: 4, 128, 128>}, {pipeline_mode = #tpu.pipeline_mode<synchronous>, transform_indices = @transform_2, window_bounds = array<i64: 4, 128, 128>}, {pipeline_mode = #tpu.pipeline_mode<synchronous>, transform_indices = @transform_3, window_bounds = array<i64: 4, 8, 128>}, {transform_indices = @transform_4, window_bounds = array<i64: 8, 128>}]} {
    %c0_i32 = arith.constant 0 : i32
    %0 = arith.cmpi eq, %arg1, %c0_i32 : i32
    %1 = arith.extui %0 : i1 to i32
    %c0_i32_0 = arith.constant 0 : i32
    %2 = arith.cmpi ne, %1, %c0_i32_0 : i32
    scf.if %2 {
      %c0_23 = arith.constant 0 : index
      %c0_24 = arith.constant 0 : index
      %99 = vector.load %arg3[%c0_23, %c0_24] : memref<8x128xf32, #tpu.memory_space<vmem>>, vector<8x128xf32>
      %c0_25 = arith.constant 0 : index
      %c0_26 = arith.constant 0 : index
      %100 = vector.load %arg8[%c0_25, %c0_26] : memref<8x128xf32, #tpu.memory_space<vmem>>, vector<8x128xf32>
      tpu.vector_store %arg8[%c0_25, %c0_26], %99 {strides = array<i32>} : memref<8x128xf32, #tpu.memory_space<vmem>>, vector<8x128xf32>,
    } else {
    }
    %c0 = arith.constant 0 : index
    %c0_1 = arith.constant 0 : index
    %3 = vector.load %arg8[%c0, %c0_1] : memref<8x128xf32, #tpu.memory_space<vmem>>, vector<8x128xf32>
    %4 = arith.index_cast %arg1 : i32 to index
    %c0_2 = arith.constant 0 : index
    %c0_3 = arith.constant 0 : index
    %5 = vector.load %arg6[%4, %c0_2, %c0_3] : memref<4x8x128xf32, #tpu.memory_space<vmem>>, vector<1x8x128xf32>
    %6 = vector.shape_cast %5 : vector<1x8x128xf32> to vector<8x128xf32>
    %7 = vector.extract_strided_slice %6 {offsets = [0, 0], sizes = [1, 128], strides = [1, 1]} : vector<8x128xf32> to vector<1x128xf32>
    %8 = vector.extract_strided_slice %6 {offsets = [1, 0], sizes = [1, 128], strides = [1, 1]} : vector<8x128xf32> to vector<1x128xf32>
    %9 = vector.extract_strided_slice %6 {offsets = [2, 0], sizes = [1, 128], strides = [1, 1]} : vector<8x128xf32> to vector<1x128xf32>
    %10 = vector.extract_strided_slice %6 {offsets = [3, 0], sizes = [1, 128], strides = [1, 1]} : vector<8x128xf32> to vector<1x128xf32>
    %11 = vector.extract_strided_slice %6 {offsets = [4, 0], sizes = [1, 128], strides = [1, 1]} : vector<8x128xf32> to vector<1x128xf32>
    %12 = vector.extract_strided_slice %6 {offsets = [5, 0], sizes = [1, 128], strides = [1, 1]} : vector<8x128xf32> to vector<1x128xf32>
    %13 = arith.truncf %3 : vector<8x128xf32> to vector<8x128xbf16>
    %14 = arith.index_cast %arg1 : i32 to index
    %c0_4 = arith.constant 0 : index
    %c0_5 = arith.constant 0 : index
    %15 = vector.load %arg4[%14, %c0_4, %c0_5] : memref<4x128x128xbf16, #tpu.memory_space<vmem>>, vector<1x128x128xbf16>
    %16 = vector.shape_cast %15 : vector<1x128x128xbf16> to vector<128x128xbf16>
    %cst = arith.constant dense<0.000000e+00> : vector<8x128xf32>
    %17 = tpu.matmul %13, %16, %cst {dimension_numbers = #tpu.dot_dimension_numbers<[1], [0], [0], [1], [0, 0, 1, 1], [], []>} : vector<8x128xbf16>, vector<128x128xbf16>, vector<8x128xf32> -> vector<8x128xf32>
    %18 = vector.broadcast %7 : vector<1x128xf32> to vector<8x128xf32>
    %19 = arith.addf %17, %18 : vector<8x128xf32>
    %20 = arith.index_cast %arg1 : i32 to index
    %c0_6 = arith.constant 0 : index
    %c0_7 = arith.constant 0 : index
    %21 = vector.load %arg5[%20, %c0_6, %c0_7] : memref<4x128x128xbf16, #tpu.memory_space<vmem>>, vector<1x128x128xbf16>
    %22 = vector.shape_cast %21 : vector<1x128x128xbf16> to vector<128x128xbf16>
    %cst_8 = arith.constant dense<0.000000e+00> : vector<8x128xf32>
    %23 = tpu.matmul %13, %22, %cst_8 {dimension_numbers = #tpu.dot_dimension_numbers<[1], [0], [0], [1], [0, 0, 1, 1], [], []>} : vector<8x128xbf16>, vector<128x128xbf16>, vector<8x128xf32> -> vector<8x128xf32>
    %24 = vector.broadcast %8 : vector<1x128xf32> to vector<8x128xf32>
    %25 = arith.addf %23, %24 : vector<8x128xf32>
    %26 = arith.index_cast %arg0 : i32 to index
    %27 = memref.load %arg2[%26] : memref<1xi32, #tpu.memory_space<smem>>
    %28 = tpu.iota {dimensions = array<i32: 0>} : vector<8x128xi32>
    %29 = vector.broadcast %27 : i32 to vector<8x128xi32>
    %30 = arith.cmpi slt, %28, %29 : vector<8x128xi32>
    %31 = arith.extui %30 : vector<8x128xi1> to vector<8x128xi32>
    %32 = arith.sitofp %31 : vector<8x128xi32> to vector<8x128xf32>
    %33 = arith.sitofp %27 : i32 to f32
    %34 = arith.mulf %19, %32 : vector<8x128xf32>
    %cst_9 = arith.constant dense<0.000000e+00> : vector<128xf32>
    %35 = vector.multi_reduction <add>, %34, %cst_9 [0] : vector<8x128xf32> to vector<128xf32>
    %36 = vector.shape_cast %35 : vector<128xf32> to vector<1x128xf32>
    %37 = vector.broadcast %33 : f32 to vector<1x128xf32>
    %38 = arith.divf %36, %37 : vector<1x128xf32>
    %39 = arith.mulf %34, %19 : vector<8x128xf32>
    %cst_10 = arith.constant dense<0.000000e+00> : vector<128xf32>
    %40 = vector.multi_reduction <add>, %39, %cst_10 [0] : vector<8x128xf32> to vector<128xf32>
    %41 = vector.shape_cast %40 : vector<128xf32> to vector<1x128xf32>
    %42 = vector.broadcast %33 : f32 to vector<1x128xf32>
    %43 = arith.divf %41, %42 : vector<1x128xf32>
    %44 = arith.mulf %38, %38 : vector<1x128xf32>
    %45 = arith.subf %43, %44 : vector<1x128xf32>
    %cst_11 = arith.constant 0.000000e+00 : f32
    %46 = vector.broadcast %cst_11 : f32 to vector<1x128xf32>
    %47 = arith.maximumf %45, %46 : vector<1x128xf32>
    %48 = vector.broadcast %38 : vector<1x128xf32> to vector<8x128xf32>
    %49 = arith.subf %19, %48 : vector<8x128xf32>
    %cst_12 = arith.constant 9.99999974E-6 : f32
    %50 = vector.broadcast %cst_12 : f32 to vector<1x128xf32>
    %51 = arith.addf %47, %50 : vector<1x128xf32>
    %52 = math.rsqrt %51 : vector<1x128xf32>
    %53 = vector.broadcast %52 : vector<1x128xf32> to vector<8x128xf32>
    %54 = arith.mulf %49, %53 : vector<8x128xf32>
    %55 = vector.broadcast %9 : vector<1x128xf32> to vector<8x128xf32>
    %56 = arith.mulf %54, %55 : vector<8x128xf32>
    %57 = vector.broadcast %11 : vector<1x128xf32> to vector<8x128xf32>
    %58 = arith.addf %56, %57 : vector<8x128xf32>
    %59 = arith.mulf %25, %32 : vector<8x128xf32>
    %cst_13 = arith.constant dense<0.000000e+00> : vector<128xf32>
    %60 = vector.multi_reduction <add>, %59, %cst_13 [0] : vector<8x128xf32> to vector<128xf32>
    %61 = vector.shape_cast %60 : vector<128xf32> to vector<1x128xf32>
    %62 = vector.broadcast %33 : f32 to vector<1x128xf32>
    %63 = arith.divf %61, %62 : vector<1x128xf32>
    %64 = arith.mulf %59, %25 : vector<8x128xf32>
    %cst_14 = arith.constant dense<0.000000e+00> : vector<128xf32>
    %65 = vector.multi_reduction <add>, %64, %cst_14 [0] : vector<8x128xf32> to vector<128xf32>
    %66 = vector.shape_cast %65 : vector<128xf32> to vector<1x128xf32>
    %67 = vector.broadcast %33 : f32 to vector<1x128xf32>
    %68 = arith.divf %66, %67 : vector<1x128xf32>
    %69 = arith.mulf %63, %63 : vector<1x128xf32>
    %70 = arith.subf %68, %69 : vector<1x128xf32>
    %cst_15 = arith.constant 0.000000e+00 : f32
    %71 = vector.broadcast %cst_15 : f32 to vector<1x128xf32>
    %72 = arith.maximumf %70, %71 : vector<1x128xf32>
    %73 = vector.broadcast %63 : vector<1x128xf32> to vector<8x128xf32>
    %74 = arith.subf %25, %73 : vector<8x128xf32>
    %cst_16 = arith.constant 9.99999974E-6 : f32
    %75 = vector.broadcast %cst_16 : f32 to vector<1x128xf32>
    %76 = arith.addf %72, %75 : vector<1x128xf32>
    %77 = math.rsqrt %76 : vector<1x128xf32>
    %78 = vector.broadcast %77 : vector<1x128xf32> to vector<8x128xf32>
    %79 = arith.mulf %74, %78 : vector<8x128xf32>
    %80 = vector.broadcast %10 : vector<1x128xf32> to vector<8x128xf32>
    %81 = arith.mulf %79, %80 : vector<8x128xf32>
    %82 = vector.broadcast %12 : vector<1x128xf32> to vector<8x128xf32>
    %83 = arith.addf %81, %82 : vector<8x128xf32>
    %84 = arith.negf %83 : vector<8x128xf32>
    %85 = math.exp %84 : vector<8x128xf32>
    %cst_17 = arith.constant 1.000000e+00 : f32
    %86 = vector.broadcast %cst_17 : f32 to vector<8x128xf32>
    %87 = arith.addf %86, %85 : vector<8x128xf32>
    %88 = arith.divf %86, %87 : vector<8x128xf32>
    %89 = arith.mulf %58, %88 : vector<8x128xf32>
    %c0_i32_18 = arith.constant 0 : i32
    %90 = arith.cmpi eq, %arg1, %c0_i32_18 : i32
    %91 = arith.extui %90 : i1 to i32
    %c0_i32_19 = arith.constant 0 : i32
    %92 = arith.cmpi ne, %91, %c0_i32_19 : i32
    scf.if %92 {
      %c0_23 = arith.constant 0 : index
      %c0_24 = arith.constant 0 : index
      %99 = vector.load %arg8[%c0_23, %c0_24] : memref<8x128xf32, #tpu.memory_space<vmem>>, vector<8x128xf32>
      tpu.vector_store %arg8[%c0_23, %c0_24], %89 {strides = array<i32>} : memref<8x128xf32, #tpu.memory_space<vmem>>, vector<8x128xf32>,
    } else {
    }
    %c0_i32_20 = arith.constant 0 : i32
    %93 = arith.cmpi sgt, %arg1, %c0_i32_20 : i32
    %94 = arith.extui %93 : i1 to i32
    %c0_i32_21 = arith.constant 0 : i32
    %95 = arith.cmpi ne, %94, %c0_i32_21 : i32
    scf.if %95 {
      %99 = arith.addf %3, %89 : vector<8x128xf32>
      %cst_23 = arith.constant 0.707106769 : f32
      %100 = vector.broadcast %cst_23 : f32 to vector<8x128xf32>
      %101 = arith.mulf %99, %100 : vector<8x128xf32>
      %c0_24 = arith.constant 0 : index
      %c0_25 = arith.constant 0 : index
      %102 = vector.load %arg8[%c0_24, %c0_25] : memref<8x128xf32, #tpu.memory_space<vmem>>, vector<8x128xf32>
      tpu.vector_store %arg8[%c0_24, %c0_25], %101 {strides = array<i32>} : memref<8x128xf32, #tpu.memory_space<vmem>>, vector<8x128xf32>,
    } else {
    }
    %c3_i32 = arith.constant 3 : i32
    %96 = arith.cmpi eq, %arg1, %c3_i32 : i32
    %97 = arith.extui %96 : i1 to i32
    %c0_i32_22 = arith.constant 0 : i32
    %98 = arith.cmpi ne, %97, %c0_i32_22 : i32
    scf.if %98 {
      %c0_23 = arith.constant 0 : index
      %c0_24 = arith.constant 0 : index
      %99 = vector.load %arg8[%c0_23, %c0_24] : memref<8x128xf32, #tpu.memory_space<vmem>>, vector<8x128xf32>
      %c0_25 = arith.constant 0 : index
      %c0_26 = arith.constant 0 : index
      %100 = vector.load %arg7[%c0_25, %c0_26] : memref<8x128xf32, #tpu.memory_space<vmem>>, vector<8x128xf32>
      tpu.vector_store %arg7[%c0_25, %c0_26], %99 {strides = array<i32>} : memref<8x128xf32, #tpu.memory_space<vmem>>, vector<8x128xf32>,
    } else {
    }
    return
  }
  func.func @transform_0(%arg0: i32, %arg1: i32, %arg2: memref<1xi32, #tpu.memory_space<smem>>) -> (i32, i32) {
    %c0_i32 = arith.constant 0 : i32
    %c0_i32_0 = arith.constant 0 : i32
    return %arg0, %c0_i32 : i32, i32
  }
  func.func @transform_1(%arg0: i32, %arg1: i32, %arg2: memref<1xi32, #tpu.memory_space<smem>>) -> (i32, i32, i32) {
    %c0_i32 = arith.constant 0 : i32
    %c0_i32_0 = arith.constant 0 : i32
    %c0_i32_1 = arith.constant 0 : i32
    %c0_i32_2 = arith.constant 0 : i32
    return %c0_i32, %c0_i32_0, %c0_i32_1 : i32, i32, i32
  }
  func.func @transform_2(%arg0: i32, %arg1: i32, %arg2: memref<1xi32, #tpu.memory_space<smem>>) -> (i32, i32, i32) {
    %c0_i32 = arith.constant 0 : i32
    %c0_i32_0 = arith.constant 0 : i32
    %c0_i32_1 = arith.constant 0 : i32
    %c0_i32_2 = arith.constant 0 : i32
    return %c0_i32, %c0_i32_0, %c0_i32_1 : i32, i32, i32
  }
  func.func @transform_3(%arg0: i32, %arg1: i32, %arg2: memref<1xi32, #tpu.memory_space<smem>>) -> (i32, i32, i32) {
    %c0_i32 = arith.constant 0 : i32
    %c0_i32_0 = arith.constant 0 : i32
    %c0_i32_1 = arith.constant 0 : i32
    %c0_i32_2 = arith.constant 0 : i32
    return %c0_i32, %c0_i32_0, %c0_i32_1 : i32, i32, i32
  }
  func.func @transform_4(%arg0: i32, %arg1: i32, %arg2: memref<1xi32, #tpu.memory_space<smem>>) -> (i32, i32) {
    %c0_i32 = arith.constant 0 : i32
    %c0_i32_0 = arith.constant 0 : i32
    return %arg0, %c0_i32 : i32, i32
  }
}

</mosaic_0001>

<bundles_post_ra>
// kernel: tpu_custom_call.1
= control target key start
LH: loop header
LB: loop body
LE: loop exit
PB: predicated region body
PF: predicated region fallthrough
CT: control target
= control target key end

     0   :  { %s1293_s0 = inlined_call_operand.<no memory space> [shape: s32[1], index: 0, kind: input, shape index: {}]   ;;  %s1294_s1 = inlined_call_operand.hbm [shape: f32[8,128], index: 1, kind: input, shape index: {}]   ;;  %s1295_s2 = inlined_call_operand.hbm [shape: bf16[4,128,128], index: 2, kind: input, shape index: {}]   ;;  %s1296_s3 = inlined_call_operand.hbm [shape: bf16[4,128,128], index: 3, kind: input, shape index: {}]   ;;  %s1297_s4 = inlined_call_operand.hbm [shape: f32[4,8,128], index: 4, kind: input, shape index: {}]   ;;  %s1298_s5 = inlined_call_operand.hbm [shape: f32[8,128], index: 5, kind: output, shape index: {}]  }
   0x1   :  { %10 = sst [smem:[#allocation4]] %s1293_s0 }
   0x2   :  { %11 = vsyncpa [#allocation6], 0 }
   0x3   :  { %12 = vsyncpa [#allocation9], 0 }
   0x4   :  { %13 = vsyncpa [#allocation12], 0 }
   0x5   :  { %14 = vsyncpa [#allocation7], 0  ;;  %s1093_s20 = smov 0   ;;  %s1095_s21 = smov 0  }
   0x6   :  { %s1097_s22 = smov 0  }
   0x7 LB: > { %s1049_s0 = smov [#allocation8]   ;;  %s676_s24 = sadd.s32 4294967295, %s1047_s22   ;;  %s1047_s22 = sphi %s1097_s22, %s20_s22   ;;  %s1043_s21 = sphi %s1095_s21, %s1305_s21   ;;  %s1039_s20 = sphi %s1093_s20, %s1304_s20  }
   0x8   : > { %s177_s23 = sshll.u32 %s1049_s0, 4  ;;  %p677_p0 = scmp.ge.s32.totalorder %s1047_s22, 1  ;;  %s178_s23 = int_to_ptr.vmem [resolvable:$true] %s177_s23 }
   0x9   : > { %p152_p1 = scmp.lt.s32.totalorder %s1047_s22, 5  ;;  %p1113_p2 = scmp.eq.s32.totalorder %s676_s24, 0 }
   0xa   : > { %s29_s28 = sadd.s32 1, %s1043_s21  ;;  %s1050_s30 = smov [#allocation5]  }
   0xb   : > { %p1117_p3 = pnand %p677_p0, %p152_p1  ;;  %p1130_p6 = scmp.ge.s32.totalorder %s29_s28, 4 }
   0xc   : > { %s167_s6 = sshll.u32 %s1050_s30, 4  ;;  %s892_s7 = scalar_lea.vmem %s178_s23, 4096  ;;  %s168_s6 = int_to_ptr.vmem [resolvable:$true] %s167_s6 }
   0xd   : > { %p797_p4 = pneg %p1117_p3  ;;  %p893_p8 = scmp.ne.s32.totalorder %s178_s23, %s892_s7 }
   0xe   : > { %p900_p11 = scmp.lt.s32.totalorder %s178_s23, %s178_s23  ;;  %p901_p12 = scmp.lt.s32.totalorder %s892_s7, %s892_s7 }
   0xf   : > { %p1125_p5 = pnand %p1113_p2, %p797_p4 }
  0x10   : > { %p902_p13 = por %p901_p12, %p900_p11 }
  0x11   : > { %p883_p7 = pneg %p1125_p5 }
  0x13   : > { %p895_p9 = pnand %p893_p8, %p883_p7 }
  0x15   : > { %p896_p10 = pneg %p895_p9 }
  0x17   : > { %p903_p0 = pnand %p902_p13, %p896_p10 }
  0x19   : > { %906 = shalt.err (!%p903_p0)
}
  0x1a   : > { %s1051_s8 = smov 64   ;;  %s1052_s9 = smov 4  }
  0x1b   : > { %803 = dma.hbm_to_vmem [thread:$0]  (!%p1125_p5), %s1295_s2, 4096, %s178_s23, [#allocation9], %s1051_s8, %s1051_s8, %s1052_s9  }
  0x1c   : > { %s1307_s28 = smov (%p1130_p6, %s29_s28), 0  ;;  %s918_s12 = scalar_lea.vmem %s168_s6, 128 }
  0x1d   : > { %p919_p1 = scmp.ne.s32.totalorder %s168_s6, %s918_s12  ;;  %p926_p9 = scmp.lt.s32.totalorder %s168_s6, %s168_s6 }
  0x1e   : > { %p927_p10 = scmp.lt.s32.totalorder %s918_s12, %s918_s12 }
  0x1f   : > { %p921_p4 = pnand %p919_p1, %p883_p7 }
  0x20   : > { %p928_p11 = por %p927_p10, %p926_p9 }
  0x21   : > { %p922_p8 = pneg %p921_p4 }
  0x23   : > { %p929_p12 = pnand %p928_p11, %p922_p8 }
  0x25   : > { %932 = shalt.err (!%p929_p12)
}
  0x26   : > { %800 = dma.hbm_to_vmem [thread:$0]  (!%p1125_p5), %s1294_s1, 128, %s168_s6, [#allocation6]  }
  0x27   : > { %s1053_s15 = smov [#allocation10]   ;;  %s1054_s17 = smov [#allocation11]  }
  0x28   : > { %s190_s16 = sshll.u32 %s1053_s15, 4  ;;  %s203_s18 = sshll.u32 %s1054_s17, 4  ;;  %s191_s16 = int_to_ptr.vmem [resolvable:$true] %s190_s16  ;;  %s204_s18 = int_to_ptr.vmem [resolvable:$true] %s203_s18 }
  0x29   : > { %s944_s19 = scalar_lea.vmem %s191_s16, 4096  ;;  %p952_p1 = scmp.lt.s32.totalorder %s191_s16, %s191_s16 }
  0x2a   : > { %p945_p6 = scmp.ne.s32.totalorder %s191_s16, %s944_s19  ;;  %p953_p4 = scmp.lt.s32.totalorder %s944_s19, %s944_s19 }
  0x2c   : > { %p947_p13 = pnand %p945_p6, %p883_p7  ;;  %p954_p8 = por %p953_p4, %p952_p1 }
  0x2e   : > { %p948_p0 = pneg %p947_p13 }
  0x30   : > { %p955_p9 = pnand %p954_p8, %p948_p0 }
  0x32   : > { %958 = shalt.err (!%p955_p9)
}
  0x33   : > { %806 = dma.hbm_to_vmem [thread:$0]  (!%p1125_p5), %s1296_s3, 4096, %s191_s16, [#allocation9], %s1051_s8, %s1051_s8, %s1052_s9  }
  0x34   : > { %s970_s29 = scalar_lea.vmem %s204_s18, 512  ;;  %p978_p6 = scmp.lt.s32.totalorder %s204_s18, %s204_s18 }
  0x35   : > { %p971_p10 = scmp.ne.s32.totalorder %s204_s18, %s970_s29  ;;  %p979_p13 = scmp.lt.s32.totalorder %s970_s29, %s970_s29 }
  0x37   : > { %p973_p11 = pnand %p971_p10, %p883_p7  ;;  %p980_p0 = por %p979_p13, %p978_p6 }
  0x39   : > { %p974_p12 = pneg %p973_p11 }
  0x3b   : > { %p981_p1 = pnand %p980_p0, %p974_p12 }
  0x3d   : > { %984 = shalt.err (!%p981_p1)
}
  0x3e   : > { %s1055_s30 = smov 128   ;;  %s1056_s6 = smov 8  }
  0x3f   : > { %809 = dma.hbm_to_vmem [thread:$0]  (!%p1125_p5), %s1297_s4, 512, %s204_s18, [#allocation12], %s1055_s30, %s1055_s30, %s1056_s6  }
  0x40   : > { %219 = sbr.rel (%p1117_p3) target bundleno = 428 (0x1ac), region = 36 }
  0x45   : > { %1022 = dma.done.wait (%p1113_p2), [#allocation6], 128  }
  0x46   : > { %1024 = vsyncadd (%p1113_p2), [#allocation6], 4294967168 }
  0x47   : > { %1026 = dma.done.wait (%p1113_p2), [#allocation9], 8192  }
  0x48   : > { %1028 = vsyncadd (%p1113_p2), [#allocation9], 4294959104 }
  0x49   : > { %1030 = dma.done.wait (%p1113_p2), [#allocation12], 512  }
  0x4a   : > { %1032 = vsyncadd (%p1113_p2), [#allocation12], 4294966784  ;;  %p687_p3 = scmp.ne.s32.totalorder %s1039_s20, 0 }
  0x4c   : > { %251 = sbr.rel (%p687_p3) target bundleno = 83 (0x53), region = 56 }
  0x51   : > { %v252_v0 = vld [vmem:[#allocation5] sm:$0xff] }
  0x52   : > { %253 = vst [vmem:[#allocation2] sm:$0xff] %v252_v0 }
  0x53 PF: > { %s717_s26 = sshll.u32 %s1039_s20, 6  ;;  %v1057_v1 = vmov 0.0   ;;  %vm1058_vm0 = vmmov 0   ;;  %v278_v20 = vlaneseq  ;;  %s480_s8 = sld [smem:[#allocation4]] }
  0x54   : > { %737 = vmatprep.subr.bf16.mxu0 %v1057_v1  ;;  %757 = vmatprep.subr.bf16.mxu1 %v1057_v1  ;;  %s1198_s27 = scalar_lea.vmem [#allocation8], %s717_s26  ;;  %s1203_s25 = scalar_lea.vmem [#allocation10], %s717_s26 }
  0x55   : > { %v855_v2 = vld [vmem:[%s1198_s27 + $0x38] sm:$0xff]   ;;  %753 = vmatprep.mubr.msk.bf16.mxu0 %vm1058_vm0, %v1057_v1  ;;  %773 = vmatprep.mubr.msk.bf16.mxu1 %vm1058_vm0, %v1057_v1  ;;  %v857_v4 = vld [vmem:[%s1198_s27 + $0x30] sm:$0xff]   ;;  %v859_v6 = vld [vmem:[%s1198_s27 + $0x28] sm:$0xff]   ;;  %s688_s9 = sshll.u32 %s1039_s20, 3  ;;  %v1239_v21 = vshrl.u32 %v278_v20, 7 }
  0x56   : > { %v856_v3 = vld [vmem:[%s1203_s25 + $0x38] sm:$0xff]   ;;  %738 = vmatpush3.bf16.msra.mxu0 %v855_v2  ;;  %v858_v5 = vld [vmem:[%s1203_s25 + $0x30] sm:$0xff]   ;;  %v860_v7 = vld [vmem:[%s1203_s25 + $0x28] sm:$0xff]   ;;  %s256_s11 = scalar_lea.vmem [#allocation11], %s688_s9 }
  0x57   : > { %758 = vmatpush3.bf16.msra.mxu1 %v856_v3  ;;  %739 = vmatprep.subr.bf16.mxu0 %v1057_v1  ;;  %v861_v8 = vld [vmem:[%s1198_s27 + $0x20] sm:$0xff]   ;;  %v863_v10 = vld [vmem:[%s1198_s27 + $0x18] sm:$0xff]   ;;  %v865_v12 = vld [vmem:[%s1198_s27 + $0x10] sm:$0xff]   ;;  %v280_v22 = vsub.s32 0, %v1239_v21  ;;  %v390_v23 = vsub.s32 1, %v1239_v21 }
  0x58   : > { %759 = vmatprep.subr.bf16.mxu1 %v1057_v1  ;;  %v862_v9 = vld [vmem:[%s1203_s25 + $0x20] sm:$0xff]   ;;  %v864_v11 = vld [vmem:[%s1203_s25 + $0x18] sm:$0xff]   ;;  %v866_v13 = vld [vmem:[%s1203_s25 + $0x10] sm:$0xff]  }
  0x59   : > { %v867_v14 = vld [vmem:[%s1198_s27 + $0x8] sm:$0xff]   ;;  %v869_v16 = vld [vmem:[%s1198_s27] sm:$0xff]   ;;  %v483_v25 = vstv %s480_s8  ;;  %s487_s12 = scvt.s32.f32 %s480_s8 }
  0x5a   : > { %740 = vmatpush3.bf16.msra.mxu0 %v857_v4  ;;  %v868_v15 = vld [vmem:[%s1203_s25 + $0x8] sm:$0xff]   ;;  %v1231_v17 = vld [vmem:[#allocation2] sm:$0xff]  ;;  %vm484_vm1 = vcmp.lt.s32.totalorder %v1239_v21, %v483_v25 }
  0x5b   : > { %760 = vmatpush3.bf16.msra.mxu1 %v858_v5  ;;  %741 = vmatprep.subr.bf16.mxu0 %v1057_v1  ;;  %v870_v18 = vld [vmem:[%s1203_s25] sm:$0xff]   ;;  %v258_v19 = vpack.c.bf16 %v1231_v17, %v1231_v17  ;;  %v495_v28 = vstv %s487_s12  ;;  %v708_v30 = vsel %vm484_vm1, 1.0, %v1057_v1 }
  0x5c   : > { %761 = vmatprep.subr.bf16.mxu1 %v1057_v1  ;;  %v1243_v24 = vld [vmem:[%s256_s11] sm:$0xff]  ;;  %871 = vrcp.f32 %v495_v28 }
  0x5d   : > { %v281_v26 = vrot.slane %v1243_v24, %v280_v22  ;;  %v391_v27 = vrot.slane %v1243_v24, %v390_v23 }
  0x5e   : > { %742 = vmatpush3.bf16.msra.mxu0 %v859_v6 }
  0x5f   : > { %762 = vmatpush3.bf16.msra.mxu1 %v860_v7  ;;  %743 = vmatprep.subr.bf16.mxu0 %v1057_v1 }
  0x60   : > { %763 = vmatprep.subr.bf16.mxu1 %v1057_v1 }
  0x62   : > { %744 = vmatpush3.bf16.msra.mxu0 %v861_v8 }
  0x63   : > { %764 = vmatpush3.bf16.msra.mxu1 %v862_v9  ;;  %745 = vmatprep.subr.bf16.mxu0 %v1057_v1 }
  0x64   : > { %765 = vmatprep.subr.bf16.mxu1 %v1057_v1 }
  0x66   : > { %746 = vmatpush3.bf16.msra.mxu0 %v863_v10 }
  0x67   : > { %766 = vmatpush3.bf16.msra.mxu1 %v864_v11  ;;  %747 = vmatprep.subr.bf16.mxu0 %v1057_v1 }
  0x68   : > { %767 = vmatprep.subr.bf16.mxu1 %v1057_v1 }
  0x69   : > { %v872_v56 = vpop.eup %871 }
  0x6a   : > { %748 = vmatpush3.bf16.msra.mxu0 %v865_v12  ;;  %v548_v12 = vsub.s32 3, %v1239_v21 }
  0x6b   : > { %768 = vmatpush3.bf16.msra.mxu1 %v866_v13  ;;  %749 = vmatprep.subr.bf16.mxu0 %v1057_v1 }
  0x6c   : > { %769 = vmatprep.subr.bf16.mxu1 %v1057_v1 }
  0x6e   : > { %750 = vmatpush3.bf16.msra.mxu0 %v867_v14 }
  0x6f   : > { %770 = vmatpush3.bf16.msra.mxu1 %v868_v15  ;;  %751 = vmatprep.subr.bf16.mxu0 %v1057_v1  ;;  %v553_v15 = vsub.s32 5, %v1239_v21 }
  0x70   : > { %771 = vmatprep.subr.bf16.mxu1 %v1057_v1 }
  0x71   : > { %v554_v23 = vrot.slane %v1243_v24, %v553_v15 }
  0x72   : > { %752 = vmatpush3.bf16.msra.mxu0 %v869_v16 }
  0x73   : > { %772 = vmatpush3.bf16.msra.mxu1 %v870_v18  ;;  %v549_v18 = vrot.slane %v1243_v24, %v548_v12 }
  0x75   : > { %754 = vmatmul.mubr.bf16.vlgmr.msra.gmra.mxu0 %v258_v19 }
  0x76   : > { %774 = vmatmul.mubr.bf16.vlgmr.msra.gmra.mxu1 %v258_v19 }
 0x135   : > { %v364_v29 = vpop.f32.mrf.mxu0 }
 0x136   : > { %v474_v31 = vpop.f32.mrf.mxu1  ;;  %v1249_v32 = vadd.f32 %v364_v29, %v281_v26 }
 0x137   : > { %v475_v33 = vadd.f32 %v474_v31, %v391_v27  ;;  %v755_v34 = vpop.f32.mrf.mxu0 }
 0x138   : > { %v775_v35 = vpop.f32.mrf.mxu1  ;;  %v488_v39 = vmul.f32 %v708_v30, %v1249_v32  ;;  %v515_v34 = vsub.s32 2, %v1239_v21 }
 0x139   : > { %v523_v36 = vmul.f32 %v708_v30, %v475_v33  ;;  %v367_v37 = vpop.f32.mrf.mxu0 }
 0x13a   : > { %v477_v38 = vpop.f32.mrf.mxu1  ;;  %v489_v46 = vrot.slane %v488_v39, 4  ;;  %v498_v47 = vmul.f32 %v488_v39, %v1249_v32  ;;  %v516_v37 = vrot.slane %v1243_v24, %v515_v34 }
 0x13b   : > { %v524_v40 = vrot.slane %v523_v36, 4  ;;  %v531_v41 = vmul.f32 %v523_v36, %v475_v33  ;;  %v756_v42 = vpop.f32.mrf.mxu0  ;;  %v520_v38 = vsub.s32 4, %v1239_v21 }
 0x13c   : > { %v776_v43 = vpop.f32.mrf.mxu1  ;;  %v490_v52 = vadd.f32 %v489_v46, %v488_v39  ;;  %v499_v53 = vrot.slane %v498_v47, 4 }
 0x13d   : > { %v525_v44 = vadd.f32 %v524_v40, %v523_v36  ;;  %v532_v45 = vrot.slane %v531_v41, 4  ;;  %v521_v40 = vrot.slane %v1243_v24, %v520_v38 }
 0x13e   : > { %v491_v59 = vrot.slane %v490_v52, 2  ;;  %v500_v60 = vadd.f32 %v499_v53, %v498_v47 }
 0x13f   : > { %v526_v48 = vrot.slane %v525_v44, 2  ;;  %v533_v49 = vadd.f32 %v532_v45, %v531_v41 }
 0x140   : > { %v492_v1 = vadd.f32 %v491_v59, %v490_v52  ;;  %v501_v2 = vrot.slane %v500_v60, 2 }
 0x141   : > { %v527_v50 = vadd.f32 %v526_v48, %v525_v44  ;;  %v534_v51 = vrot.slane %v533_v49, 2 }
 0x142   : > { %v493_v5 = vrot.slane %v492_v1, 1  ;;  %v502_v6 = vadd.f32 %v501_v2, %v500_v60 }
 0x143   : > { %v528_v54 = vrot.slane %v527_v50, 1  ;;  %v535_v55 = vadd.f32 %v534_v51, %v533_v49 }
 0x144   : > { %v494_v8 = vadd.f32 %v493_v5, %v492_v1  ;;  %v503_v9 = vrot.slane %v502_v6, 1 }
 0x145   : > { %v529_v57 = vadd.f32 %v528_v54, %v527_v50  ;;  %v536_v58 = vrot.slane %v535_v55, 1 }
 0x146   : > { %v497_v10 = vmul.f32 %v872_v56, %v494_v8  ;;  %v504_v11 = vadd.f32 %v503_v9, %v502_v6 }
 0x147   : > { %v530_v61 = vmul.f32 %v872_v56, %v529_v57  ;;  %v537_v62 = vadd.f32 %v536_v58, %v535_v55 }
 0x148   : > { %v505_v13 = vmul.f32 %v872_v56, %v504_v11  ;;  %v506_v14 = vmul.f32 %v497_v10, %v497_v10  ;;  %v509_v35 = vsub.f32 %v1249_v32, %v497_v10 }
 0x149   : > { %v538_v63 = vmul.f32 %v872_v56, %v537_v62  ;;  %v539_v0 = vmul.f32 %v530_v61, %v530_v61  ;;  %v542_v16 = vsub.f32 %v475_v33, %v530_v61 }
 0x14a   : > { %v507_v20 = vsub.f32 %v505_v13, %v506_v14 }
 0x14b   : > { %v540_v3 = vsub.f32 %v538_v63, %v539_v0 }
 0x14c   : > { %v508_v26 = vmax.f32 %v507_v20, 0.0 }
 0x14d   : > { %v541_v4 = vmax.f32 %v540_v3, 0.0 }
 0x14e   : > { %v510_v29 = vadd.f32 1e-05, %v508_v26 }
 0x14f   : > { %v543_v7 = vadd.f32 1e-05, %v541_v4 }
 0x151   : > { %873 = vrsqrt.f32 %v543_v7 }
 0x15e   : > { %v874_v19 = vpop.eup %873 }
 0x15f   : > { %v545_v22 = vmul.f32 %v874_v19, %v542_v16 }
 0x161   : > { %v550_v25 = vmul.f32 %v549_v18, %v545_v22 }
 0x163   : > { %v555_v27 = vadd.f32 %v554_v23, %v550_v25 }
 0x165   : > { %v709_v28 = vmul.f32 -1.442695, %v555_v27 }
 0x167   : > { %875 = vpow2.f32 %v709_v28 }
 0x168   : > { %877 = vrsqrt.f32 %v510_v29 }
 0x174   : > { %v876_v30 = vpop.eup %875 }
 0x175   : > { %v559_v31 = vadd.f32 1.0, %v876_v30  ;;  %v878_v33 = vpop.eup %877 }
 0x176   : > { %v512_v36 = vmul.f32 %v878_v33, %v509_v35 }
 0x177   : > { %879 = vrcp.f32 %v559_v31 }
 0x178   : > { %v517_v39 = vmul.f32 %v516_v37, %v512_v36 }
 0x17a   : > { %v522_v41 = vadd.f32 %v521_v40, %v517_v39 }
 0x181   : > { %565 = sbr.rel (%p687_p3) target bundleno = 392 (0x188), region = 60 }
 0x184   : > { %v880_v42 = vpop.eup %879 }
 0x185   : > { %v562_v43 = vmul.f32 %v880_v42, %v522_v41 }
 0x187   : > { %566 = vst [vmem:[#allocation2] sm:$0xff] %v562_v43 }
 0x188 PF: > { %p711_p2 = scmp.le.s32.totalorder %s1039_s20, 0 }
 0x18a   : > { %570 = sbr.rel (%p711_p2) target bundleno = 404 (0x194), region = 64 }
 0x18f   : > { %v571_v32 = vadd.f32 %v562_v43, %v1231_v17 }
 0x191   : > { %v572_v44 = vmul.f32 0.70710677, %v571_v32 }
 0x193   : > { %573 = vst [vmem:[#allocation2] sm:$0xff] %v572_v44 }
 0x194 PF: > { %p712_p5 = scmp.ne.s32.totalorder %s1039_s20, 3 }
 0x196   : > { %577 = sbr.rel (%p712_p5) target bundleno = 413 (0x19d), region = 68 }
 0x19b   : > { %v578_v21 = vld [vmem:[#allocation2] sm:$0xff] }
 0x19c   : > { %579 = vst [vmem:[#allocation13] sm:$0xff] %v578_v21 }
 0x19d PF: > { %p1269_p7 = scmp.eq.s32.totalorder %s676_s24, 3  ;;  %s1059_s14 = smov [#allocation13]  }
 0x19e   : > { %s589_s15 = sshll.u32 %s1059_s14, 4  ;;  %s590_s15 = int_to_ptr.vmem [resolvable:$true] %s589_s15 }
 0x19f   : > { %s985_s16 = scalar_lea.vmem %s590_s15, 128  ;;  %p992_p10 = scmp.lt.s32.totalorder %s590_s15, %s590_s15 }
 0x1a0   : > { %p986_p4 = scmp.ne.s32.totalorder %s590_s15, %s985_s16  ;;  %p993_p11 = scmp.lt.s32.totalorder %s985_s16, %s985_s16 }
 0x1a2   : > { %p987_p8 = pnand %p986_p4, %p1269_p7  ;;  %p994_p12 = por %p993_p11, %p992_p10 }
 0x1a4   : > { %p988_p9 = pneg %p987_p8 }
 0x1a6   : > { %p995_p6 = pnand %p994_p12, %p988_p9 }
 0x1a8   : > { %998 = shalt.err (!%p995_p6)
}
 0x1a9   : > { %794 = dma.vmem_to_hbm [thread:$0]  (%p1269_p7), %s590_s15, 128, %s1298_s5, [#allocation7]  }
 0x1aa   : > { %1034 = dma.done.wait (%p1269_p7), [#allocation7], 128  }
 0x1ab   : > { %1036 = vsyncadd (%p1269_p7), [#allocation7], 4294967168 }
 0x1ac PF: > { %s20_s22 = sadd.s32 1, %s1047_s22   ;;  %s1304_s20 = smov %s1043_s21 }
 0x1ad   : > { %p17_p13 = scmp.ge.s32.totalorder %s20_s22, 6   ;;  %s1305_s21 = smov %s1307_s28 }
 0x1af   :  { %19 = sbr.rel (!%p17_p13) target bundleno = 7 (0x7), region = 98 }
 0x1b4   :  { %602 = vsyncpa [#allocation6], 1 }
 0x1b5   :  { %604 = vsyncpa [#allocation6 + $0x1], 1 }
 0x1b6   :  { %605 = vsyncpa [#allocation9], 1 }
 0x1b7   :  { %606 = vsyncpa [#allocation12], 1 }
 0x1b8   :  { %607 = vsyncpa [#allocation7], 1 }
 0x1b9   :  { %609 = vsyncpa [#allocation7 + $0x1], 1 }

</bundles_post_ra>
